<compile_context>
chip_gen: v6e
topology: v6e:2x2x1
jax: 0.10.0
libtpu: 0.0.40
codegen_flags: <defaults>
</compile_context>

<pallas_src>
import jax
import jax.numpy as jnp
import numpy as np
from jax.experimental import pallas as pl
from jax.experimental.pallas import tpu as pltpu


def _build_position_encoding_table(d_model: int, max_seq_len: int) -> jnp.ndarray:
    """Same table as the PyTorch __init__ (with a leading zero pad row)."""
    pos = np.arange(max_seq_len, dtype=np.float64)[:, None]          # [S, 1]
    j = np.arange(d_model, dtype=np.float64)[None, :]                # [1, D]
    angle = pos / np.power(10000.0, 2.0 * np.floor(j / 2.0) / d_model)
    table = np.empty((max_seq_len, d_model), dtype=np.float64)
    table[:, 0::2] = np.sin(angle[:, 0::2])
    table[:, 1::2] = np.cos(angle[:, 1::2])
    pad_row = np.zeros((1, d_model), dtype=np.float64)
    table = np.concatenate([pad_row, table], axis=0)                  # [S+1, D]
    return jnp.asarray(table, dtype=jnp.float32)


def _pos_encoding_kernel(len_ref, rows_ref, out_ref):
    # len_ref : SMEM int32 [B]        (scalar-prefetched lengths)
    # rows_ref: VMEM f32  [T, D]      (table rows 1..T == encodings for positions 1..T)
    # out_ref : VMEM f32  [Bb, T, D]  (one batch chunk)
    c = pl.program_id(0)
    bb, t_len, _ = out_ref.shape

    rows = rows_ref[...]                                       # hoisted: loaded once
    zeros = jnp.zeros_like(rows)                               # hoisted: no per-iter broadcast
    t_col = jax.lax.broadcasted_iota(jnp.int32, (t_len, 1), 0)  # [T, 1] position index t

    for i in range(bb):                 # static unroll over the small batch chunk
        l_i = len_ref[c * bb + i]       # scalar SMEM read
        # row t gets table row (t+1) if t < L, else the all-zero pad row.
        out_ref[i] = jnp.where(t_col < l_i, rows, zeros)


def _pick_batch_chunk(batch: int, target: int = 8) -> int:
    """Largest divisor of `batch` that is <= target (amortizes grid-step overhead)."""
    for bb in range(min(batch, target), 0, -1):
        if batch % bb == 0:
            return bb
    return 1


def positional_encoding_forward(input_len: jnp.ndarray,
                                table: jnp.ndarray,
                                max_len=None) -> jnp.ndarray:
    """input_len: int array [B] or [B, 1]; table: [max_seq_len + 1, d_model]."""
    lens = jnp.reshape(input_len, (-1,)).astype(jnp.int32)     # [B]
    B = lens.shape[0]
    V, D = table.shape

    if max_len is None:
        # Mirrors torch.max(input_len): output length is data-dependent, so one
        # host sync here.  Pass a static max_len (e.g. max_seq_len or a length
        # bucket) to keep the whole forward jittable and skip this sync.
        max_len = int(jax.device_get(jnp.max(lens)))
    max_len = min(int(max_len), V - 1)
    if max_len <= 0:
        return jnp.zeros((B, 0, D), dtype=table.dtype)

    # Clamp out-of-range lengths (PyTorch nn.Embedding would raise instead).
    lens = jnp.minimum(lens, V - 1)

    # Only the addressable rows (positions 1..max_len) go to VMEM.
    rows = jax.lax.slice(table, (1, 0), (1 + max_len, D))      # [max_len, D]

    Bb = _pick_batch_chunk(B)
    grid = (B // Bb,)

    grid_spec = pltpu.PrefetchScalarGridSpec(
        num_scalar_prefetch=1,
        grid=grid,
        in_specs=[
            # trimmed table rows, resident once (same block every grid step)
            pl.BlockSpec((max_len, D), lambda c, len_ref: (0, 0)),
        ],
        out_specs=pl.BlockSpec((Bb, max_len, D), lambda c, len_ref: (c, 0, 0)),
    )

    return pl.pallas_call(
        _pos_encoding_kernel,
        out_shape=jax.ShapeDtypeStruct((B, max_len, D), table.dtype),
        grid_spec=grid_spec,
        compiler_params=pltpu.CompilerParams(
            dimension_semantics=("parallel",)),   # independent batch chunks (v7x 2-TC)
    )(lens, rows)


def _reference_forward(input_len, table):
    """Pure-JAX reference (mirrors the PyTorch forward) for sanity checking."""
    lens = jnp.reshape(input_len, (-1,)).astype(jnp.int32)
    max_len = int(jax.device_get(jnp.max(lens)))
    t = jnp.arange(max_len, dtype=jnp.int32)[None, :]          # [1, T]
    pos = jnp.where(t < lens[:, None], t + 1, 0)               # [B, T]
    return jnp.take(table, pos, axis=0)                        # [B, T, D]


if __name__ == "__main__":
    d_model = 32
    max_seq_len = 8
    batch = 2

    key = jax.random.PRNGKey(0)
    # lengths in [1, max_seq_len], shape [B, 1] as in the PyTorch docstring
    input_len = jax.random.randint(key, (batch, 1), minval=1,
                                   maxval=max_seq_len + 1, dtype=jnp.int32)

    table = _build_position_encoding_table(d_model, max_seq_len)

    out = positional_encoding_forward(input_len, table)
    out = jax.block_until_ready(out)

    ref = _reference_forward(input_len, table)
    np.testing.assert_allclose(np.asarray(out), np.asarray(ref),
                               rtol=1e-6, atol=1e-6)
    print("KERNEL_OK")
</pallas_src>

<mosaic_0001>
module attributes {stable_mosaic.version = 11 : i64} {
  func.func @_pos_encoding_kernel(%arg0: i32, %arg1: memref<2xi32, #tpu.memory_space<smem>>, %arg2: memref<6x32xf32, #tpu.memory_space<vmem>>, %arg3: memref<2x6x32xf32, #tpu.memory_space<vmem>>) attributes {dimension_semantics = [#tpu.dimension_semantics<parallel>], iteration_bounds = array<i64: 1>, scalar_prefetch = 1 : i64, scratch_operands = 0 : i64, tpu.core_type = #tpu.core_type<tc>, window_params = [{pipeline_mode = #tpu.pipeline_mode<synchronous>, transform_indices = @transform_0, window_bounds = array<i64: 6, 32>}, {transform_indices = @transform_1, window_bounds = array<i64: 2, 6, 32>}]} {
    %c0 = arith.constant 0 : index
    %c0_0 = arith.constant 0 : index
    %0 = vector.load %arg2[%c0, %c0_0] : memref<6x32xf32, #tpu.memory_space<vmem>>, vector<6x32xf32>
    %cst = arith.constant 0.000000e+00 : f32
    %1 = vector.broadcast %cst : f32 to vector<6x32xf32>
    %2 = tpu.iota {dimensions = array<i32: 0>} : vector<6x1xi32>
    %c2_i32 = arith.constant 2 : i32
    %3 = arith.muli %arg0, %c2_i32 : i32
    %c0_i32 = arith.constant 0 : i32
    %4 = arith.addi %3, %c0_i32 : i32
    %5 = arith.index_cast %4 : i32 to index
    %6 = memref.load %arg1[%5] : memref<2xi32, #tpu.memory_space<smem>>
    %7 = vector.broadcast %6 : i32 to vector<6x1xi32>
    %8 = arith.cmpi slt, %2, %7 : vector<6x1xi32>
    %9 = vector.shape_cast %8 : vector<6x1xi1> to vector<6x1xi1>
    %10 = vector.broadcast %9 : vector<6x1xi1> to vector<6x32xi1>
    %11 = arith.select %10, %0, %1 : vector<6x32xi1>, vector<6x32xf32>
    %c0_1 = arith.constant 0 : index
    %c0_2 = arith.constant 0 : index
    %c0_3 = arith.constant 0 : index
    %12 = vector.load %arg3[%c0_1, %c0_2, %c0_3] : memref<2x6x32xf32, #tpu.memory_space<vmem>>, vector<1x6x32xf32>
    %13 = vector.shape_cast %12 : vector<1x6x32xf32> to vector<6x32xf32>
    %14 = vector.shape_cast %11 : vector<6x32xf32> to vector<1x6x32xf32>
    tpu.vector_store %arg3[%c0_1, %c0_2, %c0_3], %14 {strides = array<i32>} : memref<2x6x32xf32, #tpu.memory_space<vmem>>, vector<1x6x32xf32>,
    %c2_i32_4 = arith.constant 2 : i32
    %15 = arith.muli %arg0, %c2_i32_4 : i32
    %c1_i32 = arith.constant 1 : i32
    %16 = arith.addi %15, %c1_i32 : i32
    %17 = arith.index_cast %16 : i32 to index
    %18 = memref.load %arg1[%17] : memref<2xi32, #tpu.memory_space<smem>>
    %19 = vector.broadcast %18 : i32 to vector<6x1xi32>
    %20 = arith.cmpi slt, %2, %19 : vector<6x1xi32>
    %21 = vector.shape_cast %20 : vector<6x1xi1> to vector<6x1xi1>
    %22 = vector.broadcast %21 : vector<6x1xi1> to vector<6x32xi1>
    %23 = arith.select %22, %0, %1 : vector<6x32xi1>, vector<6x32xf32>
    %c1 = arith.constant 1 : index
    %c0_5 = arith.constant 0 : index
    %c0_6 = arith.constant 0 : index
    %24 = vector.load %arg3[%c1, %c0_5, %c0_6] : memref<2x6x32xf32, #tpu.memory_space<vmem>>, vector<1x6x32xf32>
    %25 = vector.shape_cast %24 : vector<1x6x32xf32> to vector<6x32xf32>
    %26 = vector.shape_cast %23 : vector<6x32xf32> to vector<1x6x32xf32>
    tpu.vector_store %arg3[%c1, %c0_5, %c0_6], %26 {strides = array<i32>} : memref<2x6x32xf32, #tpu.memory_space<vmem>>, vector<1x6x32xf32>,
    return
  }
  func.func @transform_0(%arg0: i32, %arg1: memref<2xi32, #tpu.memory_space<smem>>) -> (i32, i32) {
    %c0_i32 = arith.constant 0 : i32
    %c0_i32_0 = arith.constant 0 : i32
    %c0_i32_1 = arith.constant 0 : i32
    return %c0_i32, %c0_i32_0 : i32, i32
  }
  func.func @transform_1(%arg0: i32, %arg1: memref<2xi32, #tpu.memory_space<smem>>) -> (i32, i32, i32) {
    %c0_i32 = arith.constant 0 : i32
    %c0_i32_0 = arith.constant 0 : i32
    %c0_i32_1 = arith.constant 0 : i32
    return %arg0, %c0_i32, %c0_i32_0 : i32, i32, i32
  }
}

</mosaic_0001>

<bundles_post_ra>
// kernel: tpu_custom_call.1
= control target key start
LH: loop header
LB: loop body
LE: loop exit
PB: predicated region body
PF: predicated region fallthrough
CT: control target
= control target key end

     0   :  { %s87_s9 = smov [#allocation3]   ;;  %s116_s0 = inlined_call_operand.hbm [shape: s32[2], index: 0, kind: input, shape index: {}]   ;;  %s117_s1 = inlined_call_operand.hbm [shape: f32[6,32], index: 1, kind: input, shape index: {}]   ;;  %s118_s2 = inlined_call_operand.vmem [shape: f32[2,6,32], index: 2, kind: output, shape index: {}]  }
   0x1   :  { %8 = dma.hbm_to_smem %s116_s0, 16, %s87_s9, [#allocation2] }
   0x2   :  { %83 = dma.done.wait [#allocation2], 16 }
   0x3   :  { %84 = vsyncadd [#allocation2], 4294967280 }
   0x4   :  { %10 = sfence }
   0x5   :  { %11 = vsyncpa [#allocation5], 0  ;;  %s88_s12 = smov [#allocation4]  }
   0x6   :  { %s18_s13 = sshll.u32 %s88_s12, 4  ;;  %s19_s13 = int_to_ptr.vmem [resolvable:$true] %s18_s13 }
   0x7   :  { %s71_s14 = scalar_lea.vmem %s19_s13, 128  ;;  %p76_p1 = scmp.lt.s32.totalorder %s19_s13, %s19_s13 }
   0x8   :  { %p72_p0 = scmp.ne.s32.totalorder %s19_s13, %s71_s14  ;;  %p77_p2 = scmp.lt.s32.totalorder %s71_s14, %s71_s14 }
   0xa   :  { %p78_p3 = por %p77_p2, %p76_p1 }
   0xc   :  { %p79_p4 = pnand %p78_p3, %p72_p0 }
   0xe   :  { %82 = shalt.err (!%p79_p4)
}
   0xf   :  { %21 = dma.hbm_to_vmem [thread:$0]  %s117_s1, 128, %s19_s13, [#allocation5]  }
  0x10   :  { %85 = dma.done.wait [#allocation5], 128  }
  0x11   :  { %86 = vsyncadd [#allocation5], 4294967168  ;;  %v26_v0 = vlaneseq  ;;  %s29_s0 = sld [smem:[#allocation3]]  ;;  %v25_v2 = vld [vmem:[#allocation4] sm:$0x3f]  ;;  %vm35_vm0 = vcmask 259072  }
  0x12   :  { %s51_s17 = sld [smem:[#allocation3 + $0x1]] }
  0x13   :  { %v27_v1 = vshrl.u32 %v26_v0, 7 }
  0x17   :  { %v30_v3 = vstv %s29_s0 }
  0x18   :  { %vm31_vm1 = vcmp.lt.s32.totalorder %v27_v1, %v30_v3  ;;  %v39_v4 = vstv %s51_s17 }
  0x19   :  { %v34_v5 = vsel %vm31_vm1, %v25_v2, 0.0  ;;  %vm40_vm2 = vcmp.lt.s32.totalorder %v27_v1, %v39_v4 }
  0x1a   :  { %36 = vst.msk [vmem:[%s118_s2] sm:$0x3f] %vm35_vm0, %v34_v5  ;;  %v43_v6 = vsel %vm40_vm2, %v25_v2, 0.0 }
  0x1b   :  { %52 = vst.msk [vmem:[%s118_s2 + $0x8] sm:$0x3f] %vm35_vm0, %v43_v6 }
  0x1c   :  { %50 = vsyncpa [#allocation5], 1 }

</bundles_post_ra>
